<compile_context>
chip_gen: v5e
topology: v5e:2x2
jax: 0.10.0
libtpu: 0.0.40
codegen_flags: <defaults>
</compile_context>

<pallas_src>
import jax
import jax.numpy as jnp
from jax import lax
from jax.experimental import pallas as pl
from jax.experimental.pallas import tpu as pltpu


def _bilinear_score_softmax_kernel(h_ref, q_ref, w_ref, o_ref):
    # h_ref: (B, L, D), q_ref: (B, M, D), w_ref: (D, D) torch-Linear weight (out, in)
    # o_ref: (B, L, M)
    B, L, D = h_ref.shape
    _, M, _ = q_ref.shape

    # Upcast once to f32; all matmul accumulation and softmax math stays f32.
    hf = h_ref[...].astype(jnp.float32).reshape(B * L, D)   # (B*L, D)
    qf = q_ref[...].astype(jnp.float32).reshape(B * M, D)   # (B*M, D)
    w = w_ref[...].astype(jnp.float32)                       # (D, D)

    # Wq[n, e] = sum_d qf[n, d] * W[e, d]   (== q @ W^T, batch folded, NT form)
    wq = lax.dot_general(
        qf, w,
        dimension_numbers=(((1,), (1,)), ((), ())),
        preferred_element_type=jnp.float32,
    )  # (B*M, D)

    # One MXU push for all batches: s_full[r, c] = sum_e hf[r, e] * wq[c, e].
    # Only the B block-diagonal (L, M) blocks are meaningful.
    s_full = lax.dot_general(
        hf, wq,
        dimension_numbers=(((1,), (1,)), ((), ())),
        preferred_element_type=jnp.float32,
    )  # (B*L, B*M)

    # Per batch: take the diagonal block, softmax over L (exact division), store.
    # Static (trace-time) Python loop -- B is tiny here.
    for b in range(B):
        s_b = s_full[b * L:(b + 1) * L, b * M:(b + 1) * M]   # (L, M), static slice
        m_b = jnp.max(s_b, axis=0, keepdims=True)            # (1, M)
        e_b = jnp.exp(s_b - m_b)                              # (L, M)
        alpha_b = e_b / jnp.sum(e_b, axis=0, keepdims=True)   # exact normalization
        o_ref[b, :, :] = alpha_b.astype(o_ref.dtype)


def bilinear_scoring(h: jax.Array, q: jax.Array, w: jax.Array,
                     *, out_dtype=jnp.float32) -> jax.Array:
    """Pallas TPU implementation of BiLinearScoringModel.forward.

    h: (B, L, D), q: (B, M, D), w: (D, D) torch-Linear weight (out_features, in_features).
    Returns alpha: (B, L, M) with softmax taken over L (dim=1 in torch).
    Inputs may be f32 or bf16; all in-kernel math is f32.
    """
    B, L, D = h.shape
    Bq, M, Dq = q.shape
    Do, Di = w.shape
    assert B == Bq and D == Dq == Di == Do

    return pl.pallas_call(
        _bilinear_score_softmax_kernel,
        out_shape=jax.ShapeDtypeStruct((B, L, M), out_dtype),
        # No grid: single invocation, full arrays resident in VMEM.
        in_specs=[
            pl.BlockSpec(memory_space=pltpu.MemorySpace.VMEM),
            pl.BlockSpec(memory_space=pltpu.MemorySpace.VMEM),
            pl.BlockSpec(memory_space=pltpu.MemorySpace.VMEM),
        ],
        out_specs=pl.BlockSpec(memory_space=pltpu.MemorySpace.VMEM),
        compiler_params=pltpu.CompilerParams(
            vmem_limit_bytes=32 * 1024 * 1024,
        ),
    )(h, q, w)


def _reference(h, q, w):
    wq = jnp.einsum("bmd,ed->bme", h.dtype.type(1) * q, w)   # q @ W^T
    s = jnp.einsum("ble,bme->blm", h, wq)                    # h @ Wq^T
    return jax.nn.softmax(s, axis=1)


if __name__ == "__main__":
    # Shapes implied by the module: batch=2, max_sen_len=8, n_queries=8, vec_dim=32.
    B, L, M, D = 2, 8, 8, 32
    key = jax.random.PRNGKey(0)
    kh, kq, kw = jax.random.split(key, 3)
    h = jax.random.normal(kh, (B, L, D), dtype=jnp.float32)
    q = jax.random.normal(kq, (B, M, D), dtype=jnp.float32)
    # Weight scaled like torch nn.Linear default init: U(-1/sqrt(D), 1/sqrt(D)).
    w = jax.random.uniform(kw, (D, D), dtype=jnp.float32, minval=-1.0, maxval=1.0) \
        / jnp.sqrt(jnp.float32(D))

    ref = _reference(h, q, w)

    # f32 path: exact-division softmax inside the kernel -> tight tolerance.
    alpha = bilinear_scoring(h, q, w)
    jax.block_until_ready(alpha)
    assert alpha.shape == (B, L, M)
    assert jnp.allclose(alpha, ref, atol=1e-5, rtol=1e-5), \
        float(jnp.max(jnp.abs(alpha - ref)))

    # bf16-input path: same kernel, f32 math inside; value-checked against the
    # f32 reference (error comes only from the bf16 input quantization).
    alpha_bf16 = bilinear_scoring(
        h.astype(jnp.bfloat16), q.astype(jnp.bfloat16), w.astype(jnp.bfloat16))
    jax.block_until_ready(alpha_bf16)
    assert alpha_bf16.shape == (B, L, M)
    assert jnp.allclose(alpha_bf16, ref, atol=3e-2, rtol=3e-2), \
        float(jnp.max(jnp.abs(alpha_bf16 - ref)))

    print("KERNEL_OK")
</pallas_src>

<mosaic_0001>
module attributes {stable_mosaic.version = 11 : i64} {
  func.func @_bilinear_score_softmax_kernel(%arg0: memref<2x8x32xf32, #tpu.memory_space<vmem>>, %arg1: memref<2x8x32xf32, #tpu.memory_space<vmem>>, %arg2: memref<32x32xf32, #tpu.memory_space<vmem>>, %arg3: memref<2x8x8xf32, #tpu.memory_space<vmem>>) attributes {dimension_semantics = [], scalar_prefetch = 0 : i64, scratch_operands = 0 : i64, tpu.core_type = #tpu.core_type<tc>} {
    %c0 = arith.constant 0 : index
    %c0_0 = arith.constant 0 : index
    %c0_1 = arith.constant 0 : index
    %0 = vector.load %arg0[%c0, %c0_0, %c0_1] : memref<2x8x32xf32, #tpu.memory_space<vmem>>, vector<2x8x32xf32>
    %1 = vector.shape_cast %0 : vector<2x8x32xf32> to vector<16x32xf32>
    %c0_2 = arith.constant 0 : index
    %c0_3 = arith.constant 0 : index
    %c0_4 = arith.constant 0 : index
    %2 = vector.load %arg1[%c0_2, %c0_3, %c0_4] : memref<2x8x32xf32, #tpu.memory_space<vmem>>, vector<2x8x32xf32>
    %3 = vector.shape_cast %2 : vector<2x8x32xf32> to vector<16x32xf32>
    %c0_5 = arith.constant 0 : index
    %c0_6 = arith.constant 0 : index
    %4 = vector.load %arg2[%c0_5, %c0_6] : memref<32x32xf32, #tpu.memory_space<vmem>>, vector<32x32xf32>
    %cst = arith.constant dense<0.000000e+00> : vector<16x32xf32>
    %5 = tpu.matmul %3, %4, %cst {dimension_numbers = #tpu.dot_dimension_numbers<[1], [1], [0], [0], [0, 0, 1, 0], [], []>} : vector<16x32xf32>, vector<32x32xf32>, vector<16x32xf32> -> vector<16x32xf32>
    %cst_7 = arith.constant dense<0.000000e+00> : vector<16x16xf32>
    %6 = tpu.matmul %1, %5, %cst_7 {dimension_numbers = #tpu.dot_dimension_numbers<[1], [1], [0], [0], [0, 0, 1, 0], [], []>} : vector<16x32xf32>, vector<16x32xf32>, vector<16x16xf32> -> vector<16x16xf32>
    %7 = vector.extract_strided_slice %6 {offsets = [0, 0], sizes = [8, 8], strides = [1, 1]} : vector<16x16xf32> to vector<8x8xf32>
    %cst_8 = arith.constant dense<0xFF800000> : vector<8xf32>
    %8 = vector.multi_reduction <maximumf>, %7, %cst_8 [0] : vector<8x8xf32> to vector<8xf32>
    %9 = vector.shape_cast %8 : vector<8xf32> to vector<1x8xf32>
    %10 = vector.broadcast %9 : vector<1x8xf32> to vector<8x8xf32>
    %11 = arith.subf %7, %10 : vector<8x8xf32>
    %12 = math.exp %11 : vector<8x8xf32>
    %cst_9 = arith.constant dense<0.000000e+00> : vector<8xf32>
    %13 = vector.multi_reduction <add>, %12, %cst_9 [0] : vector<8x8xf32> to vector<8xf32>
    %14 = vector.shape_cast %13 : vector<8xf32> to vector<1x8xf32>
    %15 = vector.broadcast %14 : vector<1x8xf32> to vector<8x8xf32>
    %16 = arith.divf %12, %15 : vector<8x8xf32>
    %c0_10 = arith.constant 0 : index
    %c0_11 = arith.constant 0 : index
    %c0_12 = arith.constant 0 : index
    %17 = vector.load %arg3[%c0_10, %c0_11, %c0_12] : memref<2x8x8xf32, #tpu.memory_space<vmem>>, vector<1x8x8xf32>
    %18 = vector.shape_cast %17 : vector<1x8x8xf32> to vector<8x8xf32>
    %19 = vector.shape_cast %16 : vector<8x8xf32> to vector<1x8x8xf32>
    tpu.vector_store %arg3[%c0_10, %c0_11, %c0_12], %19 {strides = array<i32>} : memref<2x8x8xf32, #tpu.memory_space<vmem>>, vector<1x8x8xf32>,
    %20 = vector.extract_strided_slice %6 {offsets = [8, 8], sizes = [8, 8], strides = [1, 1]} : vector<16x16xf32> to vector<8x8xf32>
    %cst_13 = arith.constant dense<0xFF800000> : vector<8xf32>
    %21 = vector.multi_reduction <maximumf>, %20, %cst_13 [0] : vector<8x8xf32> to vector<8xf32>
    %22 = vector.shape_cast %21 : vector<8xf32> to vector<1x8xf32>
    %23 = vector.broadcast %22 : vector<1x8xf32> to vector<8x8xf32>
    %24 = arith.subf %20, %23 : vector<8x8xf32>
    %25 = math.exp %24 : vector<8x8xf32>
    %cst_14 = arith.constant dense<0.000000e+00> : vector<8xf32>
    %26 = vector.multi_reduction <add>, %25, %cst_14 [0] : vector<8x8xf32> to vector<8xf32>
    %27 = vector.shape_cast %26 : vector<8xf32> to vector<1x8xf32>
    %28 = vector.broadcast %27 : vector<1x8xf32> to vector<8x8xf32>
    %29 = arith.divf %25, %28 : vector<8x8xf32>
    %c1 = arith.constant 1 : index
    %c0_15 = arith.constant 0 : index
    %c0_16 = arith.constant 0 : index
    %30 = vector.load %arg3[%c1, %c0_15, %c0_16] : memref<2x8x8xf32, #tpu.memory_space<vmem>>, vector<1x8x8xf32>
    %31 = vector.shape_cast %30 : vector<1x8x8xf32> to vector<8x8xf32>
    %32 = vector.shape_cast %29 : vector<8x8xf32> to vector<1x8x8xf32>
    tpu.vector_store %arg3[%c1, %c0_15, %c0_16], %32 {strides = array<i32>} : memref<2x8x8xf32, #tpu.memory_space<vmem>>, vector<1x8x8xf32>,
    return
  }
}

</mosaic_0001>

<bundles_post_ra>
// kernel: tpu_custom_call.1
= control target key start
LH: loop header
LB: loop body
LE: loop exit
PB: predicated region body
PF: predicated region fallthrough
CT: control target
= control target key end

     0   :  { %8 = vsyncpa [#allocation3], 0  ;;  %s442_s0 = inlined_call_operand.hbm [shape: f32[2,8,32], index: 0, kind: input, shape index: {}]   ;;  %s443_s1 = inlined_call_operand.hbm [shape: f32[2,8,32], index: 1, kind: input, shape index: {}]   ;;  %s444_s2 = inlined_call_operand.hbm [shape: f32[32,32], index: 2, kind: input, shape index: {}]   ;;  %s445_s3 = inlined_call_operand.hbm [shape: f32[2,8,8], index: 3, kind: output, shape index: {}]  }
   0x1   :  { %9 = vsyncpa [#allocation6], 0 }
   0x2   :  { %10 = vsyncpa [#allocation4], 0  ;;  %s28_s14 = sshll.u32 %s443_s1, 4  ;;  %s371_s15 = smov [#allocation5]   ;;  %s29_s14 = int_to_ptr.hbm [resolvable:$true] %s28_s14 }
   0x3   :  { %s30_s16 = sshll.u32 %s371_s15, 4  ;;  %s15_s19 = sshll.u32 %s442_s0, 4  ;;  %s31_s16 = int_to_ptr.vmem [resolvable:$true] %s30_s16  ;;  %s16_s19 = int_to_ptr.hbm [resolvable:$true] %s15_s19 }
   0x4   :  { %s372_s20 = smov 128   ;;  %s373_s21 = smov 8  }
   0x5   :  { %36 = dma.hbm_to_vmem [thread:$0]  %s29_s14, 256, %s31_s16, [#allocation6], %s372_s20, %s372_s20, %s373_s21  }
   0x6   :  { %s374_s22 = smov [#allocation2]   ;;  %s41_s1 = sshll.u32 %s444_s2, 4  ;;  %s42_s1 = int_to_ptr.hbm [resolvable:$true] %s41_s1 }
   0x7   :  { %s17_s23 = sshll.u32 %s374_s22, 4  ;;  %s375_s0 = smov [#allocation7]   ;;  %s18_s23 = int_to_ptr.vmem [resolvable:$true] %s17_s23 }
   0x8   :  { %23 = dma.hbm_to_vmem [thread:$0]  %s16_s19, 256, %s18_s23, [#allocation3], %s372_s20, %s372_s20, %s373_s21  }
   0x9   :  { %s43_s26 = sshll.u32 %s375_s0, 4  ;;  %s44_s26 = int_to_ptr.vmem [resolvable:$true] %s43_s26 }
   0xa   :  { %49 = dma.hbm_to_vmem [thread:$0]  %s42_s1, 512, %s44_s26, [#allocation6], %s372_s20, %s372_s20, %s373_s21  }
   0xb   :  { %365 = dma.done.wait [#allocation3], 256  }
   0xc   :  { %366 = vsyncadd [#allocation3], 4294967040 }
   0xd   :  { %367 = dma.done.wait [#allocation6], 768  }
   0xe   :  { %368 = vsyncadd [#allocation6], 4294966528  ;;  %vm70_vm0 = vcmask 261120   ;;  %v69_v0 = vld [vmem:[#allocation7 + $0x18] sm:$0xff]  ;;  %v68_v1 = vld [vmem:[#allocation7 + $0x10] sm:$0xff]  ;;  %vm147_vm1 = vcmask 64512  }
   0xf   :  { %250 = vmatpush.xpose.msk.msra.mxu2 %vm70_vm0, %v69_v0  ;;  %240 = vmatpush.xpose.msk.msra.mxu0 %vm70_vm0, %v69_v0  ;;  %v67_v2 = vld [vmem:[#allocation7 + $0x8] sm:$0xff]  ;;  %v66_v3 = vld [vmem:[#allocation7] sm:$0xff]  ;;  %v65_v4 = vld [vmem:[#allocation5 + $0x8] sm:$0xff]  ;;  %vm181_vm2 = vcmask 130112   ;;  %s376_s2 = smov 120   ;;  %s377_s27 = smov [#allocation8]  }
  0x10   :  { %v64_v5 = vld [vmem:[#allocation5] sm:$0xff]  ;;  %v62_v8 = vld [vmem:[#allocation2] sm:$0xff]  ;;  %v63_v9 = vld [vmem:[#allocation2 + $0x8] sm:$0xff]  ;;  %s224_s28 = sshll.u32 %s377_s27, 4  ;;  %s226_s4 = sshll.u32 %s445_s3, 4  ;;  %s225_s28 = int_to_ptr.vmem [resolvable:$true] %s224_s28  ;;  %s227_s4 = int_to_ptr.hbm [resolvable:$true] %s226_s4 }
  0x13   :  { %251 = vmatpush.xpose.msk.msra.mxu2 %vm70_vm0, %v68_v1  ;;  %241 = vmatpush.xpose.msk.msra.mxu0 %vm70_vm0, %v68_v1 }
  0x17   :  { %252 = vmatpush.xpose.msk.msra.mxu2 %vm70_vm0, %v67_v2  ;;  %242 = vmatpush.xpose.msk.msra.mxu0 %vm70_vm0, %v67_v2 }
  0x1b   :  { %253 = vmatpush.xpose.msk.msra.mxu2 %vm70_vm0, %v66_v3  ;;  %243 = vmatpush.xpose.msk.msra.mxu0 %vm70_vm0, %v66_v3 }
  0x1e   :  { %245 = vmatmul.msk.f32.vlgmr.msra.gmra.mxu2 %vm70_vm0, %v65_v4  ;;  %244 = vmatmul.msk.f32.vlgmr.msra.gmra.mxu0 %vm70_vm0, %v64_v5 }
  0x9b   :  { %v106_v7 = vpop.f32.mrf.mxu0 }
  0xa1   :  { %v109_v6 = vpop.f32.mrf.mxu2 }
  0xa2   :  { %246 = vmatpush.xpose.msk.msra.mxu1 %vm70_vm0, %v109_v6 }
  0xa6   :  { %247 = vmatpush.xpose.msk.msra.mxu1 %vm70_vm0, %v106_v7 }
  0xa9   :  { %248 = vmatmul.msk.f32.vlgmr.msra.gmra.mxu1 %vm70_vm0, %v62_v8 }
  0xb1   :  { %249 = vmatmul.msk.f32.gmra.mxu1 %vm70_vm0, %v63_v9 }
 0x126   :  { %v141_v10 = vpop.f32.mrf.mxu1 }
 0x127   :  { %v148_v11 = vsel %vm147_vm1, %v141_v10, -inf }
 0x128   :  { %v149_v12 = vrot.slane %v148_v11, 4 }
 0x12a   :  { %v150_v13 = vmax.f32 %v148_v11, %v149_v12 }
 0x12c   :  { %v151_v14 = vrot.slane %v150_v13, 2 }
 0x12e   :  { %v152_v15 = vmax.f32 %v150_v13, %v151_v14  ;;  %v144_v16 = vpop.f32.mrf.mxu1 }
 0x12f   :  { %v182_v17 = vsel %vm181_vm2, %v144_v16, -inf }
 0x130   :  { %v153_v18 = vrot.slane %v152_v15, 1  ;;  %v183_v19 = vrot.slane %v182_v17, 4 }
 0x132   :  { %v154_v20 = vmax.f32 %v152_v15, %v153_v18  ;;  %v184_v21 = vmax.f32 %v182_v17, %v183_v19 }
 0x134   :  { %v155_v22 = vsub.f32 %v141_v10, %v154_v20  ;;  %v185_v23 = vrot.slane %v184_v21, 2 }
 0x136   :  { %v156_v24 = vmul.f32 1.442695, %v155_v22  ;;  %v186_v25 = vmax.f32 %v184_v21, %v185_v23 }
 0x138   :  { %261 = vpow2.f32 %v156_v24  ;;  %v187_v26 = vrot.slane %v186_v25, 1 }
 0x13a   :  { %v188_v27 = vmax.f32 %v186_v25, %v187_v26 }
 0x13c   :  { %v189_v28 = vsub.f32 %v144_v16, %v188_v27 }
 0x13e   :  { %v262_v29 = vpop.eup %261  ;;  %v190_v30 = vmul.f32 1.442695, %v189_v28 }
 0x13f   :  { %v158_v31 = vsel %vm147_vm1, %v262_v29, 0.0 }
 0x140   :  { %v159_v32 = vrot.slane %v158_v31, 4  ;;  %263 = vpow2.f32 %v190_v30 }
 0x142   :  { %v160_v33 = vadd.f32 %v159_v32, %v158_v31 }
 0x144   :  { %v161_v34 = vrot.slane %v160_v33, 2 }
 0x146   :  { %v264_v35 = vpop.eup %263  ;;  %v162_v36 = vadd.f32 %v161_v34, %v160_v33 }
 0x147   :  { %v192_v37 = vsel %vm181_vm2, %v264_v35, 0.0 }
 0x148   :  { %v163_v38 = vrot.slane %v162_v36, 1  ;;  %v193_v39 = vrot.slane %v192_v37, 4 }
 0x14a   :  { %v164_v40 = vadd.f32 %v163_v38, %v162_v36  ;;  %v194_v41 = vadd.f32 %v193_v39, %v192_v37 }
 0x14c   :  { %265 = vrcp.f32 %v164_v40  ;;  %v195_v42 = vrot.slane %v194_v41, 2  ;;  %v176_v49 = vand.u32 2147483648, %v164_v40  ;;  %v174_v51 = vand.u32 2147483647, %v164_v40 }
 0x14d   :  { %vm170_vm4 = vweird.f32 %v164_v40 }
 0x14e   :  { %v196_v43 = vadd.f32 %v195_v42, %v194_v41  ;;  %v177_v53 = vor.u32 1.1754944e-38, %v176_v49  ;;  %vm175_vm6 = vcmp.eq.f32.partialorder %v174_v51, 8.507059e+37 }
 0x150   :  { %v197_v44 = vrot.slane %v196_v43, 1 }
 0x152   :  { %v266_v45 = vpop.eup %265  ;;  %v198_v47 = vadd.f32 %v197_v44, %v196_v43 }
 0x153   :  { %v166_v46 = vmul.f32 %v266_v45, %v164_v40  ;;  %vm171_vm3 = vweird.f32 %v266_v45 }
 0x154   :  { %267 = vrcp.f32 %v198_v47  ;;  %vm172_vm5 = vmor %vm170_vm4, %vm171_vm3  ;;  %v210_v60 = vand.u32 2147483648, %v198_v47  ;;  %v208_v62 = vand.u32 2147483647, %v198_v47  ;;  %vm204_vm8 = vweird.f32 %v198_v47 }
 0x155   :  { %v167_v48 = vsub.f32 1.0, %v166_v46 }
 0x156   :  { %v211_v0 = vor.u32 1.1754944e-38, %v210_v60  ;;  %vm209_vm10 = vcmp.eq.f32.partialorder %v208_v62, 8.507059e+37 }
 0x157   :  { %v168_v50 = vmul.f32 %v266_v45, %v167_v48 }
 0x159   :  { %v169_v52 = vadd.f32 %v266_v45, %v168_v50 }
 0x15a   :  { %v268_v54 = vpop.eup %267 }
 0x15b   :  { %v173_v55 = vsel %vm172_vm5, %v266_v45, %v169_v52  ;;  %v200_v57 = vmul.f32 %v268_v54, %v198_v47  ;;  %vm205_vm7 = vweird.f32 %v268_v54 }
 0x15c   :  { %v178_v56 = vsel %vm175_vm6, %v177_v53, %v173_v55  ;;  %vm206_vm9 = vmor %vm204_vm8, %vm205_vm7 }
 0x15d   :  { %v179_v58 = vmul.f32 %v262_v29, %v178_v56  ;;  %v201_v59 = vsub.f32 1.0, %v200_v57 }
 0x15f   :  { %180 = vst.msk [vmem:[#allocation8] sm:$0xff] %vm147_vm1, %v179_v58  ;;  %v202_v61 = vmul.f32 %v268_v54, %v201_v59 }
 0x161   :  { %v203_v63 = vadd.f32 %v268_v54, %v202_v61 }
 0x163   :  { %v207_v1 = vsel %vm206_vm9, %v268_v54, %v203_v63 }
 0x164   :  { %v212_v2 = vsel %vm209_vm10, %v211_v0, %v207_v1 }
 0x165   :  { %v213_v3 = vmul.f32 %v264_v35, %v212_v2 }
 0x167   :  { %215 = vrot.lane.b32.xlu0 %v213_v3, %s376_s2 }
 0x1d9   :  { %v216_v4 = vpop.permute.xlu0 %215 }
 0x1da   :  { %219 = vst.msk [vmem:[#allocation8 + $0x8] sm:$0xff] %vm147_vm1, %v216_v4 }
 0x1db   :  { %232 = dma.vmem_to_hbm [thread:$0]  %s225_s28, 256, %s227_s4, [#allocation4], %s372_s20, %s372_s20, %s373_s21  }
 0x1dc   :  { %369 = dma.done.wait [#allocation4], 256  }
 0x1dd   :  { %370 = vsyncadd [#allocation4], 4294967040 }
 0x1de   :  { %237 = vsyncpa [#allocation3], 1 }
 0x1df   :  { %238 = vsyncpa [#allocation6], 1 }
 0x1e0   :  { %239 = vsyncpa [#allocation4], 1 }

</bundles_post_ra>
